<compile_context>
chip_gen: v6e
topology: v6e:2x2x1
jax: 0.10.0
libtpu: 0.0.40
codegen_flags: <defaults>
</compile_context>

<pallas_src>
import jax
import jax.numpy as jnp
from jax.experimental import pallas as pl
from jax.experimental.pallas import tpu as pltpu


def make_label_smoothing_loss(classes: int = 120, smoothing: float = 0.1,
                              tile_n: int = 8192):
    confidence = 1.0 - smoothing
    smooth_val = smoothing / (classes - 1)

    def loss_fn(pred, target):
        n, c = pred.shape
        assert c == classes, f"expected {classes} classes, got {c}"
        tgt2d = target.astype(jnp.int32).reshape(n, 1)

        def rup(x, m):
            return ((x + m - 1) // m) * m

        # Rows per tile: multiple of 16 (covers bf16 sublane tiling), at
        # least 4 tiles so both v7x TensorCores get work, capped at tile_n.
        tn = max(16, min(tile_n, rup(pl.cdiv(n, 4), 16)))
        num_tiles = pl.cdiv(n, tn)
        needs_mask = (n % tn) != 0  # static: only the last tile is ragged

        def kernel(pred_ref, tgt_ref, out_ref):
            pred_t = pred_ref[...].astype(jnp.float32)       # (tn, C)
            tgt = tgt_ref[...]                                # (tn, 1) int32

            # Row-wise reductions only; no (N, C) logp / one-hot temporaries.
            m = jnp.max(pred_t, axis=-1, keepdims=True)                      # (tn,1)
            lse = jnp.log(jnp.sum(jnp.exp(pred_t - m), axis=-1,
                                  keepdims=True)) + m                        # (tn,1)
            col = jax.lax.broadcasted_iota(jnp.int32, pred_t.shape, 1)
            w = jnp.where(col == tgt, confidence, smooth_val)                # (tn,C)
            wsum = jnp.sum(pred_t * w, axis=-1, keepdims=True)               # (tn,1)
            # loss_row = -sum_c true_dist[c]*logp[c] = lse - sum_c td[c]*pred[c]
            loss_row = lse - wsum                                            # (tn,1)

            def write(v):
                out_ref[...] = jnp.full((1, 8, 128), v, dtype=jnp.float32)

            if not needs_mask:
                write(jnp.sum(loss_row))
            elif num_tiles == 1:
                row = jax.lax.broadcasted_iota(jnp.int32, (tn, 1), 0)
                write(jnp.sum(jnp.where(row < n, loss_row, 0.0)))
            else:
                last = num_tiles - 1

                @pl.when(pl.program_id(0) != last)
                def _():
                    write(jnp.sum(loss_row))

                @pl.when(pl.program_id(0) == last)
                def _():
                    row = last * tn + jax.lax.broadcasted_iota(
                        jnp.int32, (tn, 1), 0)
                    write(jnp.sum(jnp.where(row < n, loss_row, 0.0)))

        partials = pl.pallas_call(
            kernel,
            out_shape=jax.ShapeDtypeStruct((num_tiles, 8, 128), jnp.float32),
            grid=(num_tiles,),
            in_specs=[
                pl.BlockSpec((tn, c), lambda i: (i, 0)),
                pl.BlockSpec((tn, 1), lambda i: (i, 0)),
            ],
            out_specs=pl.BlockSpec((1, 8, 128), lambda i: (i, 0, 0)),
            compiler_params=pltpu.CompilerParams(
                dimension_semantics=("parallel",)),
        )(pred, tgt2d)

        # Finalize in the wrapper: sum of per-tile partials, one divide by N.
        return jnp.sum(partials[:, 0, 0]) / n

    return loss_fn


def reference_loss(pred, target, classes=120, smoothing=0.1):
    confidence = 1.0 - smoothing
    logp = jax.nn.log_softmax(pred.astype(jnp.float32), axis=-1)
    true_dist = jnp.full_like(logp, smoothing / (classes - 1))
    true_dist = true_dist.at[jnp.arange(pred.shape[0]), target].set(confidence)
    return jnp.mean(jnp.sum(-true_dist * logp, axis=-1))


if __name__ == "__main__":
    classes = 120
    key = jax.random.PRNGKey(0)

    # Case 1: small batch, single (ragged) tile — matches module defaults.
    kp, kt = jax.random.split(key)
    pred = jax.random.normal(kp, (8, classes), dtype=jnp.float32)
    target = jax.random.randint(kt, (8,), 0, classes, dtype=jnp.int32)
    loss_fn = make_label_smoothing_loss(classes=classes, smoothing=0.1)
    out = jax.block_until_ready(loss_fn(pred, target))
    ref = reference_loss(pred, target, classes=classes, smoothing=0.1)
    assert jnp.allclose(out, ref, rtol=1e-5, atol=1e-5), (out, ref)

    # Case 2: multi-tile grid with ragged final tile (exercises the
    # pl.when-gated masking and the parallel partial-sum path).
    kp2, kt2 = jax.random.split(kt)
    pred2 = jax.random.normal(kp2, (50, classes), dtype=jnp.float32)
    target2 = jax.random.randint(kt2, (50,), 0, classes, dtype=jnp.int32)
    loss_fn2 = make_label_smoothing_loss(classes=classes, smoothing=0.1,
                                         tile_n=16)
    out2 = jax.block_until_ready(loss_fn2(pred2, target2))
    ref2 = reference_loss(pred2, target2, classes=classes, smoothing=0.1)
    assert jnp.allclose(out2, ref2, rtol=1e-5, atol=1e-5), (out2, ref2)

    # Case 3: N not a multiple of 8/16, extreme logits, bf16 input
    # (locks in padded-lane reduction + garbage-row masking behavior).
    kp3, kt3 = jax.random.split(kt2)
    pred3 = (50.0 * jax.random.normal(kp3, (20, classes),
                                      dtype=jnp.float32)).astype(jnp.bfloat16)
    target3 = jax.random.randint(kt3, (20,), 0, classes, dtype=jnp.int32)
    loss_fn3 = make_label_smoothing_loss(classes=classes, smoothing=0.1)
    out3 = jax.block_until_ready(loss_fn3(pred3, target3))
    ref3 = reference_loss(pred3.astype(jnp.float32), target3,
                          classes=classes, smoothing=0.1)
    assert jnp.allclose(out3, ref3, rtol=1e-3, atol=1e-3), (out3, ref3)

    print("KERNEL_OK")
</pallas_src>

<mosaic_0001>
module attributes {stable_mosaic.version = 11 : i64} {
  func.func @kernel(%arg0: i32, %arg1: memref<16x120xf32, #tpu.memory_space<vmem>>, %arg2: memref<16x1xi32, #tpu.memory_space<vmem>>, %arg3: memref<1x8x128xf32, #tpu.memory_space<vmem>>) attributes {dimension_semantics = [#tpu.dimension_semantics<parallel>], iteration_bounds = array<i64: 1>, scalar_prefetch = 0 : i64, scratch_operands = 0 : i64, tpu.core_type = #tpu.core_type<tc>, window_params = [{transform_indices = @transform_0, window_bounds = array<i64: 16, 120>}, {transform_indices = @transform_1, window_bounds = array<i64: 16, 1>}, {transform_indices = @transform_2, window_bounds = array<i64: 1, 8, 128>}]} {
    %c0 = arith.constant 0 : index
    %c0_0 = arith.constant 0 : index
    %0 = vector.load %arg1[%c0, %c0_0] : memref<16x120xf32, #tpu.memory_space<vmem>>, vector<16x120xf32>
    %c0_1 = arith.constant 0 : index
    %c0_2 = arith.constant 0 : index
    %1 = vector.load %arg2[%c0_1, %c0_2] : memref<16x1xi32, #tpu.memory_space<vmem>>, vector<16x1xi32>
    %cst = arith.constant dense<0xFF800000> : vector<16xf32>
    %2 = vector.multi_reduction <maximumf>, %0, %cst [1] : vector<16x120xf32> to vector<16xf32>
    %3 = vector.shape_cast %2 : vector<16xf32> to vector<16x1xf32>
    %4 = vector.broadcast %3 : vector<16x1xf32> to vector<16x120xf32>
    %5 = arith.subf %0, %4 : vector<16x120xf32>
    %6 = math.exp %5 : vector<16x120xf32>
    %cst_3 = arith.constant dense<0.000000e+00> : vector<16xf32>
    %7 = vector.multi_reduction <add>, %6, %cst_3 [1] : vector<16x120xf32> to vector<16xf32>
    %8 = vector.shape_cast %7 : vector<16xf32> to vector<16x1xf32>
    %9 = math.log %8 : vector<16x1xf32>
    %10 = arith.addf %9, %3 : vector<16x1xf32>
    %11 = tpu.iota {dimensions = array<i32: 1>} : vector<16x120xi32>
    %12 = vector.broadcast %1 : vector<16x1xi32> to vector<16x120xi32>
    %13 = arith.cmpi eq, %11, %12 : vector<16x120xi32>
    %cst_4 = arith.constant 0.899999976 : f32
    %cst_5 = arith.constant 8.40336143E-4 : f32
    %14 = vector.broadcast %cst_4 : f32 to vector<16x120xf32>
    %15 = vector.broadcast %cst_5 : f32 to vector<16x120xf32>
    %16 = arith.select %13, %14, %15 : vector<16x120xi1>, vector<16x120xf32>
    %17 = arith.mulf %0, %16 : vector<16x120xf32>
    %cst_6 = arith.constant dense<0.000000e+00> : vector<16xf32>
    %18 = vector.multi_reduction <add>, %17, %cst_6 [1] : vector<16x120xf32> to vector<16xf32>
    %19 = vector.shape_cast %18 : vector<16xf32> to vector<16x1xf32>
    %20 = arith.subf %10, %19 : vector<16x1xf32>
    %21 = tpu.iota {dimensions = array<i32: 0>} : vector<16x1xi32>
    %c8_i32 = arith.constant 8 : i32
    %22 = vector.broadcast %c8_i32 : i32 to vector<16x1xi32>
    %23 = arith.cmpi slt, %21, %22 : vector<16x1xi32>
    %cst_7 = arith.constant 0.000000e+00 : f32
    %24 = vector.broadcast %cst_7 : f32 to vector<16x1xf32>
    %25 = arith.select %23, %20, %24 : vector<16x1xi1>, vector<16x1xf32>
    %26 = vector.shape_cast %25 : vector<16x1xf32> to vector<1x16x1xf32>
    %cst_8 = arith.constant dense<0.000000e+00> : vector<1xf32>
    %27 = vector.multi_reduction <add>, %26, %cst_8 [1, 2] : vector<1x16x1xf32> to vector<1xf32>
    %28 = vector.shape_cast %27 : vector<1xf32> to vector<1x1x1xf32>
    %29 = vector.extract %28[0, 0, 0] : f32 from vector<1x1x1xf32>
    %30 = vector.broadcast %29 : f32 to vector<1x8x128xf32>
    %c0_9 = arith.constant 0 : index
    %c0_10 = arith.constant 0 : index
    %c0_11 = arith.constant 0 : index
    %31 = vector.load %arg3[%c0_9, %c0_10, %c0_11] : memref<1x8x128xf32, #tpu.memory_space<vmem>>, vector<1x8x128xf32>
    tpu.vector_store %arg3[%c0_9, %c0_10, %c0_11], %30 {strides = array<i32>} : memref<1x8x128xf32, #tpu.memory_space<vmem>>, vector<1x8x128xf32>,
    return
  }
  func.func @transform_0(%arg0: i32) -> (i32, i32) {
    %c0_i32 = arith.constant 0 : i32
    %c0_i32_0 = arith.constant 0 : i32
    return %arg0, %c0_i32 : i32, i32
  }
  func.func @transform_1(%arg0: i32) -> (i32, i32) {
    %c0_i32 = arith.constant 0 : i32
    %c0_i32_0 = arith.constant 0 : i32
    return %arg0, %c0_i32 : i32, i32
  }
  func.func @transform_2(%arg0: i32) -> (i32, i32, i32) {
    %c0_i32 = arith.constant 0 : i32
    %c0_i32_0 = arith.constant 0 : i32
    %c0_i32_1 = arith.constant 0 : i32
    return %arg0, %c0_i32, %c0_i32_0 : i32, i32, i32
  }
}

</mosaic_0001>

<bundles_post_ra>
// kernel: tpu_custom_call.1
= control target key start
LH: loop header
LB: loop body
LE: loop exit
PB: predicated region body
PF: predicated region fallthrough
CT: control target
= control target key end

     0   :  { %vm16_vm0 = vcmask 982016   ;;  %s161_s0 = inlined_call_operand.vmem [shape: f32[8,120], index: 0, kind: input, shape index: {}]   ;;  %s162_s1 = inlined_call_operand.vmem [shape: s32[8,1], index: 1, kind: input, shape index: {}]   ;;  %s163_s2 = inlined_call_operand.hbm [shape: f32[1,8,128], index: 2, kind: output, shape index: {}]  }
   0x1   :  { %v12_v0 = vld [vmem:[%s161_s0] sm:$0xff] }
   0x2   :  { %7 = vsyncpa [#allocation3], 0  ;;  %v17_v1 = vsel %vm16_vm0, %v12_v0, -inf  ;;  %v131_v2 = vmov 0   ;;  %v14_v3 = vld [vmem:[%s162_s1] sm:$0xff]  ;;  %v41_v7 = vlaneseq  ;;  %vm70_vm2 = vcmask 7168  }
   0x3   :  { %104 = vset.pattern.permute.xlu0 %v131_v2  ;;  %v132_v10 = vmov 0.00084033614   ;;  %s133_s0 = smov [#allocation2]  }
   0x4   :  { %18 = vmax.xlane.f32.xlu0 %v17_v1  ;;  %v42_v8 = vand.u32 127, %v41_v7  ;;  %s91_s1 = sshll.u32 %s133_s0, 4  ;;  %s92_s1 = int_to_ptr.vmem [resolvable:$true] %s91_s1 }
   0x5   :  { %s109_s14 = scalar_lea.vmem %s92_s1, 128  ;;  %p114_p1 = scmp.lt.s32.totalorder %s92_s1, %s92_s1 }
   0x6   :  { %p110_p0 = scmp.ne.s32.totalorder %s92_s1, %s109_s14  ;;  %p115_p2 = scmp.lt.s32.totalorder %s109_s14, %s109_s14 }
   0x8   :  { %p116_p3 = por %p115_p2, %p114_p1 }
   0xa   :  { %p117_p4 = pnand %p116_p3, %p110_p0 }
  0x1a   :  { %44 = vperm.xlu0 %104, %v14_v3  }
  0x8d   :  { %v19_v4 = vpop.xlane.xlu0 %18 }
  0x8e   :  { %v23_v5 = vsub.f32 %v12_v0, %v19_v4 }
  0x90   :  { %v25_v6 = vmul.f32 1.442695, %v23_v5 }
  0x92   :  { %105 = vpow2.f32 %v25_v6 }
  0x95   :  { %v45_v9 = vpop.permute.xlu0 %44 }
  0x96   :  { %vm49_vm1 = vcmp.eq.s32.totalorder %v42_v8, %v45_v9 }
  0x97   :  { %v51_v11 = vsel %vm49_vm1, 0.9, %v132_v10 }
  0x98   :  { %v53_v12 = vmul.f32 %v51_v11, %v12_v0 }
  0x9a   :  { %v55_v15 = vsel %vm16_vm0, %v53_v12, 0.0 }
  0x9f   :  { %v106_v13 = vpop.eup %105 }
  0xa0   :  { %v29_v14 = vsel %vm16_vm0, %v106_v13, 0.0 }
  0xa1   :  { %30 = vadd.xlane.f32.xlu1 %v29_v14 }
  0xa5   :  { %56 = vadd.xlane.f32.xlu1 %v55_v15 }
 0x12a   :  { %v31_v16 = vpop.xlane.xlu1 %30 }
 0x12b   :  { %107 = vlog2.f32 %v31_v16 }
 0x12e   :  { %v57_v19 = vpop.xlane.xlu1 %56 }
 0x138   :  { %v108_v17 = vpop.eup %107 }
 0x139   :  { %v36_v18 = vmul.f32 0.6931472, %v108_v17 }
 0x13b   :  { %v39_v20 = vadd.f32 %v36_v18, %v19_v4 }
 0x13d   :  { %v61_v21 = vsub.f32 %v39_v20, %v57_v19 }
 0x13f   :  { %v71_v22 = vsel %vm70_vm2, %v61_v21, 0.0 }
 0x140   :  { %74 = vadd.xlane.f32.xlu1 %v71_v22 }
 0x1c9   :  { %v75_v23 = vpop.xlane.xlu1 %74 }
 0x1ca   :  { %v76_v24 = vrot.slane %v75_v23, 4 }
 0x1cc   :  { %v77_v25 = vadd.f32 %v76_v24, %v75_v23 }
 0x1ce   :  { %v78_v26 = vrot.slane %v77_v25, 2 }
 0x1d0   :  { %v79_v27 = vadd.f32 %v78_v26, %v77_v25 }
 0x1d2   :  { %v80_v28 = vrot.slane %v79_v27, 1 }
 0x1d4   :  { %v81_v29 = vadd.f32 %v80_v28, %v79_v27 }
 0x1d6   :  { %99 = vpush %v81_v29 }
 0x207   :  { %s100_s13 = spop %99 }
 0x208   :  { %v83_v30 = vstv %s100_s13 }
 0x209   :  { %84 = vst [vmem:[#allocation2] sm:$0xff] %v83_v30 }
 0x20a   :  { %120 = shalt.err (!%p117_p4)
}
 0x20b   :  { %94 = dma.vmem_to_hbm [thread:$0]  %s92_s1, 128, %s163_s2, [#allocation3]  }
 0x20c   :  { %129 = dma.done.wait [#allocation3], 128  }
 0x20d   :  { %130 = vsyncadd [#allocation3], 4294967168 }
 0x20e   :  { %98 = vsyncpa [#allocation3], 1 }

</bundles_post_ra>
